<compile_context>
chip_gen: v7x
topology: tpu7x:2x2x1
jax: 0.10.0
libtpu: 0.0.40
codegen_flags: <defaults>
</compile_context>

<pallas_src>
import functools
from types import SimpleNamespace

import jax
import jax.numpy as jnp
from jax import lax
from jax.experimental import pallas as pl
from jax.experimental.pallas import tpu as pltpu


def _round_up(x, m):
    return ((x + m - 1) // m) * m


def _pick_row_tile(h, max_rows=512):
    """Sublane tile: full H when small, else the largest multiple-of-8 divisor <= max_rows."""
    if h <= max_rows:
        return h
    for t in range(max_rows, 7, -8):
        if h % t == 0:
            return t
    return h


# ----------------------------------------------------------------------------
# Pallas kernels
# ----------------------------------------------------------------------------
def _normalize_pair_kernel(x1_ref, x2_ref, o1_ref, o2_ref):
    # x * (1/127.5) - 1.0 (matches predict_homo preprocessing); output always f32.
    s = jnp.float32(1.0 / 127.5)
    o1_ref[...] = x1_ref[...].astype(jnp.float32) * s - 1.0
    o2_ref[...] = x2_ref[...].astype(jnp.float32) * s - 1.0


def normalize_pair(x1, x2):
    """Normalise both homography-backbone inputs in one pallas_call."""
    assert x1.shape == x2.shape
    B, C, H, W = x1.shape
    th = _pick_row_tile(H)
    grid = (B, max(H // th, 1))
    spec = pl.BlockSpec((1, C, th, W), lambda b, h: (b, 0, h, 0))
    out_shape = jax.ShapeDtypeStruct((B, C, H, W), jnp.float32)
    return pl.pallas_call(
        _normalize_pair_kernel,
        out_shape=(out_shape, out_shape),
        grid=grid,
        in_specs=[spec, spec],
        out_specs=(spec, spec),
        compiler_params=pltpu.CompilerParams(
            dimension_semantics=("parallel", "parallel")),
    )(x1, x2)


def _overlap_kernel(x_ref, o_ref):
    # x_ref block holds channels 3:6 of final_warp_output for one (batch, row-tile).
    # mean(ch) < 0.9  <=>  sum(ch) < 2.7  (fold the /3 into the threshold).
    s = x_ref[0, 0] + x_ref[0, 1] + x_ref[0, 2]          # (th, W)
    o_ref[0] = jnp.where(s < jnp.float32(0.9 * 3.0), 1.0, 0.0).astype(o_ref.dtype)


def compute_overlap(final_warp_output):
    B, C6, H, W = final_warp_output.shape
    assert C6 == 6
    th = _pick_row_tile(H)
    grid = (B, max(H // th, 1))
    return pl.pallas_call(
        _overlap_kernel,
        out_shape=jax.ShapeDtypeStruct((B, H, W), jnp.float32),
        grid=grid,
        # channel block of size 3, block-index 1 -> channels 3:6
        in_specs=[pl.BlockSpec((1, 3, th, W), lambda b, h: (b, 1, h, 0))],
        out_specs=pl.BlockSpec((1, th, W), lambda b, h: (b, h, 0)),
        compiler_params=pltpu.CompilerParams(
            dimension_semantics=("parallel", "parallel")),
    )(final_warp_output)


def _windowed_sum(x, axis, k, out_len, start=0):
    """out[j] = sum_{t=0}^{k-1} x[start + j + t] along `axis`, j in [0, out_len).

    Log-depth binary decomposition of the window (k = sum of powers of two):
    ~2*log2(k) shifted adds instead of k-1 (6 vs 18 for k=19)."""
    def sl(a, begin, length):
        idx = [slice(None)] * a.ndim
        idx[axis] = slice(begin, begin + length)
        return a[tuple(idx)]

    acc = None
    cur = x          # running window-sum of width `w`
    w = 1
    off = start      # start + prefix of the k-window already accumulated
    rem = k
    while rem > 0:
        if rem & 1:
            piece = sl(cur, off, out_len)
            acc = piece if acc is None else acc + piece
            off += w
        rem >>= 1
        if rem > 0:
            n = cur.shape[axis]
            cur = sl(cur, 0, n - w) + sl(cur, w, n - w)
            w *= 2
    return acc


def _morph_kernel(x_ref, o_ref, pad_ref, *, H, W, KH, KW, numel, row_off, col_off):
    """preprocess_occlusion_mask for one (batch*channel) slice.

    The twice-zero-padded domain is built inside the kernel: the thresholded tile is
    written at an (8,128)-aligned offset (row_off, col_off) of a zero VMEM scratch and
    the windowed sums read from (row_off - 2*Ph, col_off - 2*Pw)."""
    Ph, Pw = KH // 2, KW // 2
    Hi, Wi = H + 2 * Ph, W + 2 * Pw                       # once-padded (erosion) domain

    pad_ref[...] = jnp.zeros_like(pad_ref)
    pad_ref[row_off:row_off + H, col_off:col_off + W] = (
        (x_ref[0] >= 0.5).astype(jnp.float32))
    xp = pad_ref[...]                                     # (R, C) zero-padded tile

    # --- erosion: separable ones-window sum over the (conceptual) twice-padded domain
    rs = _windowed_sum(xp, axis=1, k=KW, out_len=Wi, start=col_off - 2 * Pw)
    es = _windowed_sum(rs, axis=0, k=KH, out_len=Hi, start=row_off - 2 * Ph)
    # erosion == kernel.numel() (includes the channel count, as in torch; counts up to
    # 361 are exact in f32, so the equality is safe)
    erosion = (es == jnp.float32(numel)).astype(jnp.float32)   # (Hi, Wi)

    # --- dilation: same ones-window sum on the once-padded erosion map, single >= 1
    rs2 = _windowed_sum(erosion, axis=1, k=KW, out_len=W)
    ds = _windowed_sum(rs2, axis=0, k=KH, out_len=H)
    o_ref[0] = (ds >= 1.0).astype(jnp.float32)


def preprocess_occlusion_mask(occlusion_mask, kernel_size=(19, 19)):
    B, C, H, W = occlusion_mask.shape
    KH, KW = kernel_size
    Ph, Pw = KH // 2, KW // 2
    numel = C * 1 * KH * KW                               # kernel.numel() in torch

    # Aligned placement of the data inside the padded VMEM scratch (cheap stores).
    row_off = _round_up(2 * Ph, 8)
    col_off = _round_up(2 * Pw, 128)
    R = _round_up(row_off + H + 2 * Ph, 8)
    Cc = _round_up(col_off + W + 2 * Pw, 128)

    x = occlusion_mask.reshape(B * C, H, W)

    kern = functools.partial(_morph_kernel, H=H, W=W, KH=KH, KW=KW, numel=numel,
                             row_off=row_off, col_off=col_off)
    # TODO(synk): for 1080p-class inputs, tile (H, W) with an 18-px halo and make the
    #             output lane-dense (W padded to a multiple of 128) instead of one
    #             full image per program.
    out = pl.pallas_call(
        kern,
        out_shape=jax.ShapeDtypeStruct((B * C, H, W), jnp.float32),
        grid=(B * C,),
        in_specs=[pl.BlockSpec((1, H, W), lambda i: (i, 0, 0))],
        out_specs=pl.BlockSpec((1, H, W), lambda i: (i, 0, 0)),
        scratch_shapes=[pltpu.VMEM((R, Cc), jnp.float32)],
        compiler_params=pltpu.CompilerParams(
            dimension_semantics=("parallel",),
            vmem_limit_bytes=32 * 1024 * 1024),
    )(x)
    return out.reshape(B, C, H, W)


# ----------------------------------------------------------------------------
# Plain-JAX glue (geometry / gather-based sampling)
# ----------------------------------------------------------------------------
def tensor_DLT(src_p, dst_p):
    """Solve the 4-point DLT: src_p, dst_p (B,4,2) -> H (B,3,3)."""
    B = src_p.shape[0]
    x, y = src_p[..., 0], src_p[..., 1]
    u, v = dst_p[..., 0], dst_p[..., 1]
    z = jnp.zeros_like(x)
    o = jnp.ones_like(x)
    Ax = jnp.stack([x, y, o, z, z, z, -u * x, -u * y], axis=-1)   # (B,4,8)
    Ay = jnp.stack([z, z, z, x, y, o, -v * x, -v * y], axis=-1)   # (B,4,8)
    A = jnp.concatenate([Ax, Ay], axis=1)                         # (B,8,8)
    b = jnp.concatenate([u, v], axis=1)[..., None]                # (B,8,1)
    h = jnp.linalg.solve(A, b)[..., 0]                            # (B,8)
    h = jnp.concatenate([h, jnp.ones((B, 1), h.dtype)], axis=1)
    return h.reshape(B, 3, 3)


def _bilinear_sample(img, xq, yq):
    # img: (B,C,H,W); xq,yq: (B,N) pixel coords; zero padding outside.
    # TODO(synk): gather-based bilinear sampling has no clean Pallas TPU mapping;
    #             kept in plain JAX.
    B, C, H, W = img.shape
    x0 = jnp.floor(xq)
    y0 = jnp.floor(yq)
    x1, y1 = x0 + 1.0, y0 + 1.0
    wa = (x1 - xq) * (y1 - yq)
    wb = (x1 - xq) * (yq - y0)
    wc = (xq - x0) * (y1 - yq)
    wd = (xq - x0) * (yq - y0)
    img_flat = img.reshape(B, C, H * W)

    def gather(xi, yi):
        valid = (xi >= 0) & (xi <= W - 1) & (yi >= 0) & (yi <= H - 1)
        xc = jnp.clip(xi, 0, W - 1).astype(jnp.int32)
        yc = jnp.clip(yi, 0, H - 1).astype(jnp.int32)
        idx = jnp.broadcast_to((yc * W + xc)[:, None, :], (B, C, xi.shape[-1]))
        vals = jnp.take_along_axis(img_flat, idx, axis=2)
        return vals * valid[:, None, :].astype(img.dtype)

    return (wa[:, None, :] * gather(x0, y0) + wb[:, None, :] * gather(x0, y1)
            + wc[:, None, :] * gather(x1, y0) + wd[:, None, :] * gather(x1, y1))


def homo_transformer(U, theta, out_size):
    """Spatial transformer with a 3x3 homography in normalised [-1,1] coords."""
    B, C, Hin, Win = U.shape
    out_h, out_w = out_size
    ys = jnp.linspace(-1.0, 1.0, out_h)
    xs = jnp.linspace(-1.0, 1.0, out_w)
    gy, gx = jnp.meshgrid(ys, xs, indexing="ij")
    grid = jnp.stack([gx.ravel(), gy.ravel(), jnp.ones(out_h * out_w)], axis=0)  # (3,N)
    t = jnp.einsum("bij,jn->bin", theta, grid)
    xs_t = t[:, 0, :] / (t[:, 2, :] + 1e-9)
    ys_t = t[:, 1, :] / (t[:, 2, :] + 1e-9)
    x_pix = (xs_t + 1.0) * 0.5 * (Win - 1)
    y_pix = (ys_t + 1.0) * 0.5 * (Hin - 1)
    return _bilinear_sample(U, x_pix, y_pix).reshape(B, C, out_h, out_w)


def flow_warp(x, flow):
    """Backward warp of x (B,C,H,W) by flow (B,2,H,W)."""
    B, C, H, W = x.shape
    gy, gx = jnp.meshgrid(jnp.arange(H, dtype=jnp.float32),
                          jnp.arange(W, dtype=jnp.float32), indexing="ij")
    xq = (gx[None] + flow[:, 0]).reshape(B, -1)
    yq = (gy[None] + flow[:, 1]).reshape(B, -1)
    return _bilinear_sample(x, xq, yq).reshape(B, C, H, W)


# ----------------------------------------------------------------------------
# Deterministic stub backbones (real backbones are external modules)
# ----------------------------------------------------------------------------
class StubHomoBackbone:
    # TODO(synk): real homography backbone is an external module; replaced by a
    #             deterministic pooled-feature linear head producing 8 offsets.
    def __init__(self, in_channels=3):
        self.w = 0.1 * jax.random.normal(jax.random.PRNGKey(2),
                                         (2 * in_channels, 8), jnp.float32)

    def __call__(self, x1, x2):
        feat = jnp.concatenate([jnp.mean(x1, axis=(2, 3)),
                                jnp.mean(x2, axis=(2, 3))], axis=1)
        offset = jnp.tanh(feat @ self.w) * 2.0
        return offset, None


class StubFlowBackbone:
    # TODO(synk): real optical-flow backbone is an external module; replaced by a
    #             deterministic small residual flow.
    training = False

    def __call__(self, x1, x2, output_dict):
        B, _, H, W = x1.shape
        flow = 0.5 * jax.random.normal(jax.random.PRNGKey(1), (B, 2, H, W), jnp.float32)
        return [flow]


# ----------------------------------------------------------------------------
# The adapter
# ----------------------------------------------------------------------------
class FlowHomoAdapterPallas:
    def __init__(self, homo_backbone, flow_backbone, cfg):
        self.cfg = cfg
        self.use_forward = getattr(cfg, "use_forward", False)
        self.detach_H = getattr(cfg, "detach_H", False)
        self.detach_flow = getattr(cfg, "detach_flow", False)
        self.homo_backbone = homo_backbone
        self.flow_backbone = flow_backbone

    def predict_homo(self, input1_tensor, input2_tensor):
        # Pallas: both inputs normalised (x * (1/127.5) - 1) in a single call.
        input1, input2 = normalize_pair(input1_tensor, input2_tensor)
        offset_1, _ = self.homo_backbone(input1, input2)
        H_motion_1 = offset_1.reshape(-1, 4, 2)
        if self.detach_H:
            H_motion_1 = lax.stop_gradient(H_motion_1)
        return H_motion_1

    def predict_flow(self, input1_tensor, input2_tensor):
        output_dict = {}
        flow_predictions = self.flow_backbone(input1_tensor, input2_tensor, output_dict)
        if not self.flow_backbone.training:
            flow_predictions = [flow_predictions[0]]
        return flow_predictions

    def forward(self, input1_tensor, input2_tensor, type="train"):
        if type in ("train", "test_eval"):
            return self.train_eval_forward(input1_tensor, input2_tensor)
        # TODO(synk): test_out_forward (512-resize path, fb-consistency blending)
        #             depends on external resize / whole-resolution machinery.
        raise NotImplementedError

    def train_eval_forward(self, input1_tensor, input2_tensor):
        out_dict = {}
        B, _, img_h, img_w = input1_tensor.shape

        H_motion_1 = self.predict_homo(input1_tensor, input2_tensor)

        src_p = jnp.array([[0.0, 0.0], [img_w, 0.0], [0.0, img_h], [img_w, img_h]],
                          jnp.float32)
        src_p = jnp.broadcast_to(src_p[None], (B, 4, 2))
        dst_p = src_p + H_motion_1
        H = tensor_DLT(src_p / 8.0, dst_p / 8.0)

        M = jnp.array([[img_w / 8 / 2.0, 0.0, img_w / 8 / 2.0],
                       [0.0, img_h / 8 / 2.0, img_h / 8 / 2.0],
                       [0.0, 0.0, 1.0]], jnp.float32)
        M_inv = jnp.linalg.inv(M)
        H_mat = M_inv[None] @ H @ M[None]

        mask = jnp.ones_like(input2_tensor)
        output_H = homo_transformer(jnp.concatenate([input2_tensor, mask], axis=1),
                                    H_mat, (img_h, img_w))
        H_inv_mat = M_inv[None] @ jnp.linalg.inv(H) @ M[None]
        output_H_inv = homo_transformer(jnp.concatenate([input1_tensor, mask], axis=1),
                                        H_inv_mat, (img_h, img_w))

        if getattr(self.cfg, "only_homo", False):
            final_warp_output = output_H
            flow_predictions = None
            overlap = None
        else:
            # default branch (no use_forward / use_combine_h_flow / fb-consistency)
            warp_input2_tensor = output_H[:, 0:3]
            flow_predictions = self.predict_flow(input1_tensor, warp_input2_tensor)
            final_warp_output = flow_warp(output_H, flow_predictions[-1])
            overlap = compute_overlap(final_warp_output)   # Pallas: sum + threshold

        out_dict.update(output_H=output_H, output_H_inv=output_H_inv,
                        final_warp_output=final_warp_output, overlap=overlap,
                        flow_predictions=flow_predictions, H=H)
        return out_dict


# ----------------------------------------------------------------------------
if __name__ == "__main__":
    key = jax.random.PRNGKey(0)
    k1, k2, k3 = jax.random.split(key, 3)

    B, C, img_h, img_w = 2, 3, 16, 16
    input1 = jax.random.uniform(k1, (B, C, img_h, img_w), jnp.float32, 0.0, 255.0)
    input2 = jax.random.uniform(k2, (B, C, img_h, img_w), jnp.float32, 0.0, 255.0)

    cfg = SimpleNamespace()   # no optional flags -> default branch
    adapter = FlowHomoAdapterPallas(StubHomoBackbone(in_channels=C),
                                    StubFlowBackbone(), cfg)

    out = adapter.forward(input1, input2, type="train")
    jax.block_until_ready(out["final_warp_output"])
    jax.block_until_ready(out["overlap"])
    jax.block_until_ready(out["H"])

    # exercise the occlusion-mask morphology kernel (the listed dependent fn)
    occ = (jax.random.uniform(k3, (2, 1, 48, 48), jnp.float32) > 0.3).astype(jnp.float32)
    occ_out = preprocess_occlusion_mask(occ)
    jax.block_until_ready(occ_out)

    print("KERNEL_OK")
</pallas_src>

<mosaic_0001>
module attributes {stable_mosaic.version = 11 : i64} {
  func.func @_normalize_pair_kernel(%arg0: i32, %arg1: i32, %arg2: memref<1x3x16x16xf32, #tpu.memory_space<vmem>>, %arg3: memref<1x3x16x16xf32, #tpu.memory_space<vmem>>, %arg4: memref<1x3x16x16xf32, #tpu.memory_space<vmem>>, %arg5: memref<1x3x16x16xf32, #tpu.memory_space<vmem>>) attributes {dimension_semantics = [#tpu.dimension_semantics<parallel>, #tpu.dimension_semantics<parallel>], iteration_bounds = array<i64: 2, 1>, scalar_prefetch = 0 : i64, scratch_operands = 0 : i64, tpu.core_type = #tpu.core_type<tc>, window_params = [{transform_indices = @transform_0, window_bounds = array<i64: 1, 3, 16, 16>}, {transform_indices = @transform_1, window_bounds = array<i64: 1, 3, 16, 16>}, {transform_indices = @transform_2, window_bounds = array<i64: 1, 3, 16, 16>}, {transform_indices = @transform_3, window_bounds = array<i64: 1, 3, 16, 16>}]} {
    %c0 = arith.constant 0 : index
    %c0_0 = arith.constant 0 : index
    %c0_1 = arith.constant 0 : index
    %c0_2 = arith.constant 0 : index
    %0 = vector.load %arg2[%c0, %c0_0, %c0_1, %c0_2] : memref<1x3x16x16xf32, #tpu.memory_space<vmem>>, vector<1x3x16x16xf32>
    %cst = arith.constant 0.00784313772 : f32
    %1 = vector.broadcast %cst : f32 to vector<1x3x16x16xf32>
    %2 = arith.mulf %0, %1 : vector<1x3x16x16xf32>
    %cst_3 = arith.constant 1.000000e+00 : f32
    %3 = vector.broadcast %cst_3 : f32 to vector<1x3x16x16xf32>
    %4 = arith.subf %2, %3 : vector<1x3x16x16xf32>
    %c0_4 = arith.constant 0 : index
    %c0_5 = arith.constant 0 : index
    %c0_6 = arith.constant 0 : index
    %c0_7 = arith.constant 0 : index
    %5 = vector.load %arg4[%c0_4, %c0_5, %c0_6, %c0_7] : memref<1x3x16x16xf32, #tpu.memory_space<vmem>>, vector<1x3x16x16xf32>
    tpu.vector_store %arg4[%c0_4, %c0_5, %c0_6, %c0_7], %4 {strides = array<i32>} : memref<1x3x16x16xf32, #tpu.memory_space<vmem>>, vector<1x3x16x16xf32>,
    %c0_8 = arith.constant 0 : index
    %c0_9 = arith.constant 0 : index
    %c0_10 = arith.constant 0 : index
    %c0_11 = arith.constant 0 : index
    %6 = vector.load %arg3[%c0_8, %c0_9, %c0_10, %c0_11] : memref<1x3x16x16xf32, #tpu.memory_space<vmem>>, vector<1x3x16x16xf32>
    %cst_12 = arith.constant 0.00784313772 : f32
    %7 = vector.broadcast %cst_12 : f32 to vector<1x3x16x16xf32>
    %8 = arith.mulf %6, %7 : vector<1x3x16x16xf32>
    %cst_13 = arith.constant 1.000000e+00 : f32
    %9 = vector.broadcast %cst_13 : f32 to vector<1x3x16x16xf32>
    %10 = arith.subf %8, %9 : vector<1x3x16x16xf32>
    %c0_14 = arith.constant 0 : index
    %c0_15 = arith.constant 0 : index
    %c0_16 = arith.constant 0 : index
    %c0_17 = arith.constant 0 : index
    %11 = vector.load %arg5[%c0_14, %c0_15, %c0_16, %c0_17] : memref<1x3x16x16xf32, #tpu.memory_space<vmem>>, vector<1x3x16x16xf32>
    tpu.vector_store %arg5[%c0_14, %c0_15, %c0_16, %c0_17], %10 {strides = array<i32>} : memref<1x3x16x16xf32, #tpu.memory_space<vmem>>, vector<1x3x16x16xf32>,
    return
  }
  func.func @transform_0(%arg0: i32, %arg1: i32) -> (i32, i32, i32, i32) {
    %c0_i32 = arith.constant 0 : i32
    %c0_i32_0 = arith.constant 0 : i32
    %c0_i32_1 = arith.constant 0 : i32
    return %arg0, %c0_i32, %arg1, %c0_i32_0 : i32, i32, i32, i32
  }
  func.func @transform_1(%arg0: i32, %arg1: i32) -> (i32, i32, i32, i32) {
    %c0_i32 = arith.constant 0 : i32
    %c0_i32_0 = arith.constant 0 : i32
    %c0_i32_1 = arith.constant 0 : i32
    return %arg0, %c0_i32, %arg1, %c0_i32_0 : i32, i32, i32, i32
  }
  func.func @transform_2(%arg0: i32, %arg1: i32) -> (i32, i32, i32, i32) {
    %c0_i32 = arith.constant 0 : i32
    %c0_i32_0 = arith.constant 0 : i32
    %c0_i32_1 = arith.constant 0 : i32
    return %arg0, %c0_i32, %arg1, %c0_i32_0 : i32, i32, i32, i32
  }
  func.func @transform_3(%arg0: i32, %arg1: i32) -> (i32, i32, i32, i32) {
    %c0_i32 = arith.constant 0 : i32
    %c0_i32_0 = arith.constant 0 : i32
    %c0_i32_1 = arith.constant 0 : i32
    return %arg0, %c0_i32, %arg1, %c0_i32_0 : i32, i32, i32, i32
  }
}

</mosaic_0001>

<bundles_post_ra>
// kernel: tpu_custom_call.1
= control target key start
LH: loop header
LB: loop body
LE: loop exit
PB: predicated region body
PF: predicated region fallthrough
CT: control target
= control target key end

     0   :  { %9 = vsyncpa [#allocation3], 0  ;;  %s1135_s0 = inlined_call_operand.hbm [shape: f32[2,3,16,16], index: 0, kind: input, shape index: {}]   ;;  %s1136_s1 = inlined_call_operand.hbm [shape: f32[2,3,16,16], index: 1, kind: input, shape index: {}]   ;;  %s1137_s2 = inlined_call_operand.hbm [shape: f32[2,3,16,16], index: 2, kind: output, shape index: {0}]   ;;  %s1138_s3 = inlined_call_operand.hbm [shape: f32[2,3,16,16], index: 3, kind: output, shape index: {1}]  }
   0x1   :  { %11 = vsyncpa [#allocation3 + $0x1], 0 }
   0x2   :  { %12 = vsyncpa [#allocation6], 0 }
   0x3   :  { %14 = vsyncpa [#allocation6 + $0x1], 0 }
   0x4   :  { %15 = vsyncpa [#allocation4], 0 }
   0x5   :  { %17 = vsyncpa [#allocation4 + $0x1], 0 }
   0x6   :  { %18 = vsyncpa [#allocation9], 0 }
   0x7   :  { %20 = vsyncpa [#allocation9 + $0x1], 0  ;;  %s818_s12 = smov 0   ;;  %s820_s13 = smov 0  }
   0x8   :  { %s822_s14 = smov 0   ;;  %s824_s15 = smov 0  }
   0x9   :  { %s826_s16 = smov 0   ;;  %s828_s17 = smov 0  }
   0xa LB: > { %s504_s18 = sadd.s32 4294967295, %s788_s17   ;;  %s505_s19 = sadd.s32 4294967294, %s788_s17   ;;  %s788_s17 = sphi %s828_s17, %s26_s17   ;;  %s784_s16 = sphi %s826_s16, %s1156_s16   ;;  %s780_s15 = sphi %s824_s15, %s1155_s15   ;;  %s776_s14 = sphi %s822_s14, %s1154_s14   ;;  %s772_s13 = sphi %s820_s13, %s1153_s13   ;;  %s768_s12 = sphi %s818_s12, %s1152_s12  }
   0xb   : > { %s38_s20 = sadd.s32 1, %s784_s16  ;;  %s47_s21 = sadd.s32 1, %s776_s14 }
   0xc   : > { %p40_p0 = scmp.ge.s32.totalorder %s38_s20, 2  ;;  %p54_p1 = scmp.ne.s32.totalorder %s776_s14, %s772_s13 }
   0xd   : > { %p55_p2 = scmp.eq.s32.totalorder %s788_s17, 0  ;;  %p60_p3 = scmp.ne.s32.totalorder %s772_s13, %s768_s12 }
   0xe   : > { %s1158_s20 = smov (%p40_p0, %s38_s20), 0  ;;  %p61_p5 = scmp.eq.s32.totalorder %s504_s18, 0 }
   0xf   : > { %p859_p4 = por %p55_p2, %p54_p1  ;;  %s42_s23 = ssub.s32 %s784_s16, %s1158_s20 }
  0x10   : > { %p114_p6 = scmp.eq.s32.totalorder %s504_s18, 1  ;;  %p45_p7 = scmp.eq.s32.totalorder %s42_s23, 0 }
  0x11   : > { %p865_p8 = por %p61_p5, %p60_p3  ;;  %p120_p10 = scmp.eq.s32.totalorder %s505_s19, 1 }
  0x12   : > { %p869_p9 = por %p114_p6, %p54_p1  ;;  %p556_p13 = scmp.lt.s32.totalorder %s788_s17, 2 }
  0x13   : > { %s1142_s24 = scalar_select %p865_p8, 1, 0 }
  0x14   : > { %s1143_s25 = scalar_select %p869_p9, 1, 0 }
  0x15   : > { %s874_s26 = scalar_select %p45_p7, %s776_s14, %s47_s21  }
  0x16   : > { %p876_p11 = por %p120_p10, %p60_p3  ;;  %s883_s28 = sand.u32 1, %s776_s14  }
  0x17   : > { %s527_s29 = smul.u32 48, %s883_s28  ;;  %p889_p0 = pnand %p556_p13, %p859_p4 }
  0x18   : > { %s1144_s27 = scalar_select %p876_p11, 1, 0 }
  0x19   : > { %s528_s30 = smul.u32 768, %s784_s16  ;;  %s172_s8 = scalar_lea.vmem [#allocation2], %s527_s29 }
  0x1a   : > { %s181_s9 = sshll.u32 %s172_s8, 4  ;;  %s169_s10 = scalar_lea.sflag [#allocation3], %s883_s28  ;;  %s902_s9 = int_to_ptr.vmem [resolvable:$true] %s181_s9 }
  0x1b   : > { %s898_s7 = scalar_lea.hbm %s1135_s0, %s528_s30  ;;  %p612_p3 = pneg %p889_p0 }
  0x1c   : > { %s610_s11 = scalar_lea.hbm %s898_s7, 768  ;;  %s615_s21 = scalar_lea.hbm %s1135_s0, 1536 }
  0x1d   : > { %p611_p2 = scmp.ne.s32.totalorder %s898_s7, %s610_s11  ;;  %p616_p6 = scmp.lt.u32.totalorder %s898_s7, %s1135_s0 }
  0x1e   : > { %p617_p7 = scmp.lt.u32.totalorder %s615_s21, %s610_s11  ;;  %p619_p13 = scmp.lt.u32.totalorder %s610_s11, %s898_s7 }
  0x1f   : > { %p613_p4 = pnand %p612_p3, %p611_p2 }
  0x20   : > { %p618_p10 = por %p617_p7, %p616_p6 }
  0x21   : > { %p614_p5 = pneg %p613_p4 }
  0x22   : > { %p620_p12 = por %p619_p13, %p618_p10 }
  0x24   : > { %p621_p1 = pnand %p620_p12, %p614_p5 }
  0x26   : > { %624 = shalt.err (!%p621_p1)
}
  0x27   : > { %s625_s5 = scalar_lea.vmem %s902_s9, 768  ;;  %s790_s6 = smov [#allocation2]  }
  0x28   : > { %p626_p2 = scmp.ne.s32.totalorder %s902_s9, %s625_s5  ;;  %s630_s8 = sshll.u32 %s790_s6, 4  ;;  %s631_s8 = int_to_ptr.vmem [resolvable:$false] %s630_s8 }
  0x29   : > { %s632_s18 = scalar_lea.vmem %s631_s8, 1536  ;;  %p633_p9 = scmp.lt.s32.totalorder %s902_s9, %s631_s8 }
  0x2a   : > { %p628_p4 = pnand %p626_p2, %p612_p3  ;;  %p634_p6 = scmp.lt.s32.totalorder %s632_s18, %s625_s5 }
  0x2c   : > { %p629_p11 = pneg %p628_p4  ;;  %p635_p7 = por %p634_p6, %p633_p9 }
  0x2e   : > { %p636_p10 = pnand %p635_p7, %p629_p11 }
  0x30   : > { %639 = shalt.err (!%p636_p10)
}
  0x31   : > { %s791_s11 = smov 128   ;;  %s792_s19 = smov 8  }
  0x32   : > { %545 = dma.hbm_to_vmem [thread:$0]  (!%p889_p0), %s898_s7, 768, %s902_s9, %s169_s10, %s791_s11, %s791_s11, %s792_s19  }
  0x33   : > { %p212_p9 = scmp.lt.s32.totalorder %s788_s17, 3  ;;  %s942_s23 = scalar_lea.hbm %s1136_s1, %s528_s30 }
  0x34   : > { %p1146_p11 = scmp.ge.s32.totalorder %s788_s17, 1  ;;  %s195_s6 = scalar_lea.vmem [#allocation5], %s527_s29 }
  0x35   : > { %s204_s8 = sshll.u32 %s195_s6, 4  ;;  %s192_s7 = scalar_lea.sflag [#allocation6], %s883_s28  ;;  %s952_s8 = int_to_ptr.vmem [resolvable:$true] %s204_s8 }
  0x36   : > { %p946_p12 = pnand %p1146_p11, %p212_p9  ;;  %s640_s9 = scalar_lea.hbm %s942_s23, 768 }
  0x37   : > { %p641_p1 = scmp.ne.s32.totalorder %s942_s23, %s640_s9  ;;  %s645_s18 = scalar_lea.hbm %s1136_s1, 1536 }
  0x38   : > { %p646_p2 = scmp.lt.u32.totalorder %s942_s23, %s1136_s1  ;;  %p647_p4 = scmp.lt.u32.totalorder %s645_s18, %s640_s9 }
  0x39   : > { %p643_p5 = pnand %p641_p1, %p612_p3  ;;  %p649_p7 = scmp.lt.u32.totalorder %s640_s9, %s942_s23 }
  0x3a   : > { %p648_p6 = por %p647_p4, %p646_p2 }
  0x3b   : > { %p644_p13 = pneg %p643_p5 }
  0x3c   : > { %p650_p10 = por %p649_p7, %p648_p6 }
  0x3e   : > { %p651_p9 = pnand %p650_p10, %p644_p13 }
  0x40   : > { %654 = shalt.err (!%p651_p9)
}
  0x41   : > { %s655_s29 = scalar_lea.vmem %s952_s8, 768  ;;  %s793_s6 = smov [#allocation5]  }
  0x42   : > { %p656_p11 = scmp.ne.s32.totalorder %s952_s8, %s655_s29  ;;  %s660_s30 = sshll.u32 %s793_s6, 4  ;;  %s661_s30 = int_to_ptr.vmem [resolvable:$false] %s660_s30 }
  0x43   : > { %s662_s10 = scalar_lea.vmem %s661_s30, 1536  ;;  %p663_p8 = scmp.lt.s32.totalorder %s952_s8, %s661_s30 }
  0x44   : > { %p658_p1 = pnand %p656_p11, %p612_p3  ;;  %p664_p2 = scmp.lt.s32.totalorder %s662_s10, %s655_s29 }
  0x46   : > { %p659_p5 = pneg %p658_p1  ;;  %p665_p4 = por %p664_p2, %p663_p8 }
  0x48   : > { %p666_p6 = pnand %p665_p4, %p659_p5 }
  0x4a   : > { %669 = shalt.err (!%p666_p6)
}
  0x4b   : > { %548 = dma.hbm_to_vmem [thread:$0]  (!%p889_p0), %s942_s23, 768, %s952_s8, %s192_s7, %s791_s11, %s791_s11, %s792_s19  }
  0x4c   : > { %216 = sbr.rel (%p946_p12) target bundleno = 143 (0x8f), region = 28  ;;  %s986_s9 = sand.u32 (!%p946_p12), 1, %s772_s13  }
  0x4d   : > { %s531_s18 = smul.u32 (!%p946_p12), 48, %s986_s9  ;;  %s219_s21 = scalar_lea.sflag (!%p946_p12), [#allocation3], %s986_s9 }
  0x4e   : > { %p1148_p8 = scmp.ne.s32.totalorder (!%p946_p12), %s1142_s24, 0 }
  0x4f   : > { %s222_s4 = scalar_lea.vmem (!%p946_p12), [#allocation2], %s531_s18 }
  0x53   : > { %751 = dma.done.wait (%p1148_p8), %s219_s21, 768  }
  0x54   : > { %753 = vsyncadd (%p1148_p8), %s219_s21, 4294966528  ;;  %s228_s28 = scalar_lea.sflag [#allocation6], %s986_s9  ;;  %s995_s11 = scalar_lea.vmem [#allocation5], %s531_s18 }
  0x55   : > { %755 = dma.done.wait (%p1148_p8), %s228_s28, 768  }
  0x56   : > { %757 = vsyncadd (%p1148_p8), %s228_s28, 4294966528  ;;  %v268_v0 = vld [vmem:[%s222_s4] sm:$0xff]  ;;  %s1001_s19 = scalar_lea.vmem [#allocation7], %s531_s18  ;;  %v269_v1 = vld [vmem:[%s222_s4 + $0x8] sm:$0xff]  ;;  %s1004_s5 = scalar_lea.vmem [#allocation8], %s531_s18  ;;  %vm286_vm0 = vcmask 130048  }
  0x57   : > { %s338_s23 = sshll.u32 %s1001_s19, 4  ;;  %v270_v2 = vld [vmem:[%s222_s4 + $0x10] sm:$0xff]  ;;  %s356_s8 = sshll.u32 %s1004_s5, 4  ;;  %v274_v3 = vmul.f32 0.007843138, %v268_v0  ;;  %v271_v6 = vld [vmem:[%s222_s4 + $0x18] sm:$0xff]  ;;  %s1018_s23 = int_to_ptr.vmem [resolvable:$true] %s338_s23  ;;  %s1066_s8 = int_to_ptr.vmem [resolvable:$true] %s356_s8 }
  0x58   : > { %v275_v4 = vmul.f32 0.007843138, %v269_v1  ;;  %v276_v5 = vmul.f32 0.007843138, %v270_v2  ;;  %v272_v7 = vld [vmem:[%s222_s4 + $0x20] sm:$0xff]  ;;  %v273_v8 = vld [vmem:[%s222_s4 + $0x28] sm:$0xff] }
  0x59   : > { %s532_s24 = smul.u32 768, %s780_s15  ;;  %v511_v9 = vadd.f32 -1.0, %v274_v3  ;;  %v277_v12 = vmul.f32 0.007843138, %v271_v6  ;;  %v293_v13 = vld [vmem:[%s995_s11] sm:$0xff]  ;;  %v294_v18 = vld [vmem:[%s995_s11 + $0x8] sm:$0xff] }
  0x5a   : > { %v512_v10 = vadd.f32 -1.0, %v275_v4  ;;  %v513_v11 = vadd.f32 -1.0, %v276_v5  ;;  %v278_v14 = vmul.f32 0.007843138, %v272_v7  ;;  %v279_v15 = vmul.f32 0.007843138, %v273_v8 }
  0x5b   : > { %v299_v16 = vmul.f32 0.007843138, %v293_v13  ;;  %287 = vst.msk [vmem:[%s1001_s19] sm:$0xff] %vm286_vm0, %v511_v9  ;;  %v514_v17 = vadd.f32 -1.0, %v277_v12  ;;  %v295_v19 = vld [vmem:[%s995_s11 + $0x10] sm:$0xff]  ;;  %v296_v20 = vld [vmem:[%s995_s11 + $0x18] sm:$0xff]  ;;  %s1026_s29 = scalar_lea.hbm %s1137_s2, %s532_s24 }
  0x5c   : > { %288 = vst.msk [vmem:[%s1001_s19 + $0x8] sm:$0xff] %vm286_vm0, %v512_v10  ;;  %289 = vst.msk [vmem:[%s1001_s19 + $0x10] sm:$0xff] %vm286_vm0, %v513_v11  ;;  %v515_v21 = vadd.f32 -1.0, %v278_v14  ;;  %v516_v22 = vadd.f32 -1.0, %v279_v15  ;;  %v300_v24 = vmul.f32 0.007843138, %v294_v18 }
  0x5d   : > { %v517_v23 = vadd.f32 -1.0, %v299_v16  ;;  %v297_v25 = vld [vmem:[%s995_s11 + $0x20] sm:$0xff]  ;;  %290 = vst.msk [vmem:[%s1001_s19 + $0x18] sm:$0xff] %vm286_vm0, %v514_v17  ;;  %v301_v26 = vmul.f32 0.007843138, %v295_v19  ;;  %v298_v30 = vld [vmem:[%s995_s11 + $0x28] sm:$0xff] }
  0x5e   : > { %v302_v27 = vmul.f32 0.007843138, %v296_v20  ;;  %v303_v28 = vmul.f32 0.007843138, %v297_v25  ;;  %291 = vst.msk [vmem:[%s1001_s19 + $0x20] sm:$0xff] %vm286_vm0, %v515_v21  ;;  %292 = vst.msk [vmem:[%s1001_s19 + $0x28] sm:$0xff] %vm286_vm0, %v516_v22 }
  0x5f   : > { %311 = vst.msk [vmem:[%s1004_s5] sm:$0xff] %vm286_vm0, %v517_v23  ;;  %v518_v29 = vadd.f32 -1.0, %v300_v24  ;;  %v519_v31 = vadd.f32 -1.0, %v301_v26  ;;  %v304_v34 = vmul.f32 0.007843138, %v298_v30  ;;  %s318_s6 = scalar_lea.sflag [#allocation4], %s986_s9 }
  0x60   : > { %v520_v32 = vadd.f32 -1.0, %v302_v27  ;;  %v521_v33 = vadd.f32 -1.0, %v303_v28  ;;  %s670_s30 = scalar_lea.vmem %s1018_s23, 768  ;;  %p1149_p3 = scmp.ne.s32.totalorder %s1143_s25, 0 }
  0x61   : > { %p671_p0 = scmp.ne.s32.totalorder %s1018_s23, %s670_s30  ;;  %s794_s10 = smov [#allocation7]  }
  0x62   : > { %s674_s18 = sshll.u32 %s794_s10, 4  ;;  %s675_s18 = int_to_ptr.vmem [resolvable:$false] %s674_s18 }
  0x63   : > { %p672_p12 = pnand %p671_p0, %p1149_p3  ;;  %s676_s21 = scalar_lea.vmem %s675_s18, 1536 }
  0x64   : > { %p677_p7 = scmp.lt.s32.totalorder %s1018_s23, %s675_s18  ;;  %p678_p10 = scmp.lt.s32.totalorder %s676_s21, %s670_s30 }
  0x65   : > { %p673_p13 = pneg %p672_p12 }
  0x66   : > { %p679_p9 = por %p678_p10, %p677_p7 }
  0x68   : > { %p680_p11 = pnand %p679_p9, %p673_p13 }
  0x6a   : > { %683 = shalt.err (!%p680_p11)
}
  0x6b   : > { %s684_s4 = scalar_lea.hbm %s1026_s29, 768  ;;  %s688_s19 = scalar_lea.hbm %s1137_s2, 1536 }
  0x6c   : > { %p685_p1 = scmp.ne.s32.totalorder %s1026_s29, %s684_s4  ;;  %p689_p4 = scmp.lt.u32.totalorder %s1026_s29, %s1137_s2 }
  0x6d   : > { %p690_p6 = scmp.lt.u32.totalorder %s688_s19, %s684_s4  ;;  %p692_p0 = scmp.lt.u32.totalorder %s684_s4, %s1026_s29 }
  0x6e   : > { %p686_p5 = pnand %p685_p1, %p1149_p3 }
  0x6f   : > { %p691_p8 = por %p690_p6, %p689_p4 }
  0x70   : > { %p687_p2 = pneg %p686_p5 }
  0x71   : > { %p693_p12 = por %p692_p0, %p691_p8 }
  0x73   : > { %p694_p13 = pnand %p693_p12, %p687_p2 }
  0x75   : > { %697 = shalt.err (!%p694_p13)
}
  0x76   : > { %s795_s30 = smov 128   ;;  %s796_s10 = smov 8   ;;  %312 = vst.msk [vmem:[%s1004_s5 + $0x8] sm:$0xff] %vm286_vm0, %v518_v29  ;;  %313 = vst.msk [vmem:[%s1004_s5 + $0x10] sm:$0xff] %vm286_vm0, %v519_v31  ;;  %v522_v35 = vadd.f32 -1.0, %v304_v34 }
  0x77   : > { %538 = dma.vmem_to_hbm [thread:$0]  (%p1149_p3), %s1018_s23, 768, %s1026_s29, %s318_s6, %s795_s30, %s795_s30, %s796_s10  }
  0x78   : > { %314 = vst.msk [vmem:[%s1004_s5 + $0x18] sm:$0xff] %vm286_vm0, %v520_v32  ;;  %315 = vst.msk [vmem:[%s1004_s5 + $0x20] sm:$0xff] %vm286_vm0, %v521_v33  ;;  %s1081_s23 = scalar_lea.hbm %s1138_s3, %s532_s24  ;;  %s323_s29 = scalar_lea.sflag [#allocation9], %s986_s9 }
  0x79   : > { %316 = vst.msk [vmem:[%s1004_s5 + $0x28] sm:$0xff] %vm286_vm0, %v522_v35  ;;  %s698_s6 = scalar_lea.vmem %s1066_s8, 768  ;;  %s797_s4 = smov [#allocation8]  }
  0x7a   : > { %p699_p7 = scmp.ne.s32.totalorder %s1066_s8, %s698_s6  ;;  %s702_s28 = sshll.u32 %s797_s4, 4  ;;  %s703_s28 = int_to_ptr.vmem [resolvable:$false] %s702_s28 }
  0x7b   : > { %s704_s11 = scalar_lea.vmem %s703_s28, 1536  ;;  %p705_p11 = scmp.lt.s32.totalorder %s1066_s8, %s703_s28 }
  0x7c   : > { %p700_p10 = pnand %p699_p7, %p1149_p3  ;;  %p706_p1 = scmp.lt.s32.totalorder %s704_s11, %s698_s6 }
  0x7e   : > { %p701_p9 = pneg %p700_p10  ;;  %p707_p5 = por %p706_p1, %p705_p11 }
  0x80   : > { %p708_p2 = pnand %p707_p5, %p701_p9 }
  0x82   : > { %711 = shalt.err (!%p708_p2)
}
  0x83   : > { %s712_s15 = scalar_lea.hbm %s1081_s23, 768  ;;  %s716_s19 = scalar_lea.hbm %s1138_s3, 1536 }
  0x84   : > { %p713_p4 = scmp.ne.s32.totalorder %s1081_s23, %s712_s15  ;;  %p717_p0 = scmp.lt.u32.totalorder %s1081_s23, %s1138_s3 }
  0x85   : > { %p718_p12 = scmp.lt.u32.totalorder %s716_s19, %s712_s15  ;;  %p720_p7 = scmp.lt.u32.totalorder %s712_s15, %s1081_s23 }
  0x86   : > { %p714_p6 = pnand %p713_p4, %p1149_p3 }
  0x87   : > { %p719_p13 = por %p718_p12, %p717_p0 }
  0x88   : > { %p715_p8 = pneg %p714_p6 }
  0x89   : > { %p721_p10 = por %p720_p7, %p719_p13 }
  0x8b   : > { %p722_p9 = pnand %p721_p10, %p715_p8 }
  0x8d   : > { %725 = shalt.err (!%p722_p9)
}
  0x8e   : > { %539 = dma.vmem_to_hbm [thread:$0]  (%p1149_p3), %s1066_s8, 768, %s1081_s23, %s323_s29, %s795_s30, %s795_s30, %s796_s10  }
  0x8f PF: > { %s371_s18 = sand.u32 1, %s768_s12   ;;  %p1150_p11 = scmp.ne.s32.totalorder %s1144_s27, 0 }
  0x90   : > { %p1151_p1 = scmp.ge.s32.totalorder %s788_s17, 2  ;;  %s372_s21 = scalar_lea.sflag [#allocation4], %s371_s18 }
  0x92   : > { %p550_p5 = pnand %p1151_p1, %p1150_p11 }
  0x94   : > { %759 = dma.done.wait (!%p550_p5), %s372_s21, 768  }
  0x95   : > { %761 = vsyncadd (!%p550_p5), %s372_s21, 4294966528  ;;  %s381_s25 = scalar_lea.sflag [#allocation9], %s371_s18 }
  0x96   : > { %763 = dma.done.wait (!%p550_p5), %s381_s25, 768  }
  0x97   : > { %765 = vsyncadd (!%p550_p5), %s381_s25, 4294966528  ;;  %s26_s17 = sadd.s32 1, %s788_s17   ;;  %s1152_s12 = smov %s772_s13 }
  0x98   : > { %p23_p2 = scmp.ge.s32.totalorder %s26_s17, 4   ;;  %s1153_s13 = smov %s776_s14 }
  0x99   : > { %s1154_s14 = smov %s874_s26  ;;  %s1155_s15 = smov %s784_s16 }
  0x9a   : > { %s1156_s16 = smov %s1158_s20  ;;  %25 = sbr.rel (!%p23_p2) target bundleno = 10 (0xa), region = 103 }
  0xa1   :  { %386 = vsyncpa [#allocation3], 1 }
  0xa2   :  { %388 = vsyncpa [#allocation3 + $0x1], 1 }
  0xa3   :  { %389 = vsyncpa [#allocation6], 1 }
  0xa4   :  { %391 = vsyncpa [#allocation6 + $0x1], 1 }
  0xa5   :  { %392 = vsyncpa [#allocation4], 1 }
  0xa6   :  { %394 = vsyncpa [#allocation4 + $0x1], 1 }
  0xa7   :  { %395 = vsyncpa [#allocation9], 1 }
  0xa8   :  { %397 = vsyncpa [#allocation9 + $0x1], 1 }

</bundles_post_ra>
